<compile_context>
chip_gen: v5e
topology: v5e:2x2
jax: 0.10.0
libtpu: 0.0.40
codegen_flags: <defaults>
</compile_context>

<pallas_src>
import functools

import jax
import jax.numpy as jnp
from jax import lax
from jax.experimental import pallas as pl
from jax.experimental.pallas import tpu as pltpu


def _nce_loss_kernel(vis_r_ref, txt_c_ref, txt_r_ref, vis_c_ref,
                     out_ref, m_a, l_a, m_b, l_b, *, inv_temp: float):
    j = pl.program_id(1)
    last_j = pl.num_programs(1) - 1

    @pl.when(j == 0)
    def _():
        m_a[...] = jnp.full_like(m_a, -jnp.inf)
        l_a[...] = jnp.zeros_like(l_a)
        m_b[...] = jnp.full_like(m_b, -jnp.inf)
        l_b[...] = jnp.zeros_like(l_b)

    # Contract the feature dim of both operands directly -> no transpose,
    # operands reach the MXU in their natural [rows, D] layout / native dtype.
    dn = (((1,), (1,)), ((), ()))
    # t2v block: vis rows x txt "columns"
    s_ab = lax.dot_general(vis_r_ref[...], txt_c_ref[...],
                           dimension_numbers=dn,
                           preferred_element_type=jnp.float32) * inv_temp
    # v2t block: txt rows x vis "columns" (keeps the second LSE a lane-axis
    # reduction instead of an axis=0 reduce of s_ab)
    s_ba = lax.dot_general(txt_r_ref[...], vis_c_ref[...],
                           dimension_numbers=dn,
                           preferred_element_type=jnp.float32) * inv_temp

    # Online logsumexp update, t2v direction.
    m_new = jnp.maximum(m_a[...], jnp.max(s_ab, axis=1, keepdims=True))
    l_a[...] = (l_a[...] * jnp.exp(m_a[...] - m_new)
                + jnp.sum(jnp.exp(s_ab - m_new), axis=1, keepdims=True))
    m_a[...] = m_new

    # Online logsumexp update, v2t direction.
    m_new2 = jnp.maximum(m_b[...], jnp.max(s_ba, axis=1, keepdims=True))
    l_b[...] = (l_b[...] * jnp.exp(m_b[...] - m_new2)
                + jnp.sum(jnp.exp(s_ba - m_new2), axis=1, keepdims=True))
    m_b[...] = m_new2

    # Epilogue: diagonal from the two resident i-indexed row blocks, then a
    # single fused per-row output (no separate tiny reductions afterwards).
    @pl.when(j == last_j)
    def _():
        prod = (vis_r_ref[...].astype(jnp.float32)
                * txt_r_ref[...].astype(jnp.float32))
        diag = jnp.sum(prod, axis=1, keepdims=True) * inv_temp
        out_ref[...] = (m_a[...] + jnp.log(l_a[...])
                        + m_b[...] + jnp.log(l_b[...])
                        - 2.0 * diag)


def _vmem_limit_bytes() -> int:
    """Generation-aware scoped-VMEM limit (leave ~12 MiB headroom)."""
    try:
        cap = int(pltpu.get_tpu_info().vmem_capacity_bytes)
    except Exception:
        cap = 64 << 20        # conservative: v7x per-TC physical VMEM
    return max(cap - (12 << 20), 16 << 20)


def _pick_tiles(B: int, D: int, itemsize: int, vmem_budget: int):
    """Column tile = MXU-native width; row tile = as big as VMEM allows,
    preferring >=2 row blocks so the 'parallel' axis can shard across cores."""
    tb_c = B
    for cand in (256, 128):
        if B % cand == 0:
            tb_c = cand
            break

    def vmem_est(tr):
        streams = 2 * 2 * (tr + tb_c) * D * itemsize   # 4 streams, double-buffered
        temps = 4 * tr * tb_c * 4                       # f32 score/exp temporaries
        scratch = 5 * tr * 4                            # accumulators + output tile
        return streams + temps + scratch

    cands = sorted({t for t in (2048, 1024, 512, 256, 128, 64, 32, 16, 8)
                    if B % t == 0} | {B}, reverse=True)
    cands = [c for c in cands if c == B or c % 8 == 0]

    for c in cands:                                     # prefer >=2 row blocks
        if vmem_est(c) <= vmem_budget and B // c >= 2:
            return c, tb_c
    for c in cands:                                     # else largest that fits
        if vmem_est(c) <= vmem_budget:
            return c, tb_c
    return cands[-1], tb_c


def nce_contrastive_loss(vis_feat: jax.Array, text_feat: jax.Array,
                         temp: float = 0.05,
                         block_rows: int | None = None,
                         block_cols: int | None = None,
                         cast_to_bf16: bool = True) -> jax.Array:
    """Pallas TPU implementation of NCEContrastiveLoss.forward.

    vis_feat:  (B, D)
    text_feat: (B, D)
    returns:   scalar f32 loss
    """
    B, D = vis_feat.shape
    assert text_feat.shape == (B, D)

    # Feed the MXU bf16 (halves HBM traffic; softmax math stays f32 in-kernel).
    if cast_to_bf16 and vis_feat.dtype == jnp.float32:
        vis_feat = vis_feat.astype(jnp.bfloat16)
        text_feat = text_feat.astype(jnp.bfloat16)

    # Zero-pad D to a lane-aligned multiple of 128 (loss is unchanged).
    Dp = max(128, ((D + 127) // 128) * 128)
    if Dp != D:
        pad = ((0, 0), (0, Dp - D))
        vis_feat = jnp.pad(vis_feat, pad)
        text_feat = jnp.pad(text_feat, pad)
        D = Dp

    itemsize = jnp.dtype(vis_feat.dtype).itemsize
    vmem_limit = _vmem_limit_bytes()
    tb_r_auto, tb_c_auto = _pick_tiles(B, D, itemsize, int(vmem_limit * 0.75))
    tb_r = tb_r_auto if block_rows is None else block_rows
    tb_c = tb_c_auto if block_cols is None else block_cols
    assert B % tb_r == 0 and (tb_r == B or tb_r % 8 == 0)
    assert B % tb_c == 0 and (tb_c == B or tb_c % 8 == 0)

    kernel = functools.partial(_nce_loss_kernel, inv_temp=1.0 / float(temp))

    row_spec = pl.BlockSpec((tb_r, D), lambda i, j: (i, 0))
    col_spec = pl.BlockSpec((tb_c, D), lambda i, j: (j, 0))
    out_spec = pl.BlockSpec((tb_r, 1), lambda i, j: (i, 0))

    per_row = pl.pallas_call(
        kernel,
        out_shape=jax.ShapeDtypeStruct((B, 1), jnp.float32),
        grid_spec=pltpu.PrefetchScalarGridSpec(
            num_scalar_prefetch=0,
            grid=(B // tb_r, B // tb_c),
            in_specs=[row_spec, col_spec, row_spec, col_spec],
            out_specs=out_spec,
            scratch_shapes=[pltpu.VMEM((tb_r, 1), jnp.float32)] * 4,
        ),
        compiler_params=pltpu.CompilerParams(
            dimension_semantics=("parallel", "arbitrary"),
            vmem_limit_bytes=vmem_limit),
    )(vis_feat, text_feat, text_feat, vis_feat)

    # per_row[i] = lse_t2v_i + lse_v2t_i - 2*diag_i ; tiny final sum in JAX.
    return jnp.sum(per_row) / B


def _reference_loss(vis_feat, text_feat, temp):
    # Pure-JAX reference matching F.cross_entropy semantics.
    t2v = (vis_feat.astype(jnp.float32) @ text_feat.astype(jnp.float32).T) / temp
    labels = jnp.arange(t2v.shape[0])

    def ce(logits, labels):
        lse = jax.scipy.special.logsumexp(logits, axis=1)
        tgt = jnp.take_along_axis(logits, labels[:, None], axis=1)[:, 0]
        return jnp.mean(lse - tgt)

    return ce(t2v, labels) + ce(t2v.T, labels)


if __name__ == "__main__":
    key = jax.random.PRNGKey(0)
    k1, k2 = jax.random.split(key)

    temp = 0.05           # cfg.temp

    # 1) Exact-path check (no bf16 cast) at a small paired batch.
    B, D = 8, 32
    vis_feat = jax.random.normal(k1, (B, D), dtype=jnp.float32)
    text_feat = jax.random.normal(k2, (B, D), dtype=jnp.float32)
    loss = jax.block_until_ready(
        nce_contrastive_loss(vis_feat, text_feat, temp=temp, cast_to_bf16=False))
    ref = _reference_loss(vis_feat, text_feat, temp)
    assert jnp.allclose(loss, ref, rtol=1e-5, atol=1e-4), (loss, ref)

    # 2) Multi-block grid path (online LSE across j, 2 row blocks), default
    #    bf16 feed; reference sees the same bf16-rounded inputs.
    B2, D2 = 16, 32
    v2 = jax.random.normal(jax.random.PRNGKey(1), (B2, D2), dtype=jnp.float32)
    t2 = jax.random.normal(jax.random.PRNGKey(2), (B2, D2), dtype=jnp.float32)
    loss2 = jax.block_until_ready(
        nce_contrastive_loss(v2, t2, temp=temp, block_rows=8, block_cols=8))
    ref2 = _reference_loss(v2.astype(jnp.bfloat16), t2.astype(jnp.bfloat16), temp)
    assert jnp.allclose(loss2, ref2, rtol=1e-3, atol=1e-2), (loss2, ref2)

    # 3) Auto-picked rectangular tiles (row tile != col tile) + D padding path.
    B3, D3 = 64, 160
    v3 = jax.random.normal(jax.random.PRNGKey(3), (B3, D3), dtype=jnp.float32)
    t3 = jax.random.normal(jax.random.PRNGKey(4), (B3, D3), dtype=jnp.float32)
    loss3 = jax.block_until_ready(nce_contrastive_loss(v3, t3, temp=temp))
    ref3 = _reference_loss(v3.astype(jnp.bfloat16), t3.astype(jnp.bfloat16), temp)
    assert jnp.allclose(loss3, ref3, rtol=1e-3, atol=1e-2), (loss3, ref3)

    print("KERNEL_OK")
</pallas_src>

<mosaic_0001>
module attributes {stable_mosaic.version = 11 : i64} {
  func.func @_nce_loss_kernel(%arg0: i32, %arg1: i32, %arg2: memref<8x128xf32, #tpu.memory_space<vmem>>, %arg3: memref<8x128xf32, #tpu.memory_space<vmem>>, %arg4: memref<8x128xf32, #tpu.memory_space<vmem>>, %arg5: memref<8x128xf32, #tpu.memory_space<vmem>>, %arg6: memref<8x1xf32, #tpu.memory_space<vmem>>, %arg7: memref<8x1xf32, #tpu.memory_space<vmem>>, %arg8: memref<8x1xf32, #tpu.memory_space<vmem>>, %arg9: memref<8x1xf32, #tpu.memory_space<vmem>>, %arg10: memref<8x1xf32, #tpu.memory_space<vmem>>) attributes {dimension_semantics = [#tpu.dimension_semantics<parallel>, #tpu.dimension_semantics<arbitrary>], iteration_bounds = array<i64: 1, 1>, scalar_prefetch = 0 : i64, scratch_operands = 4 : i64, tpu.core_type = #tpu.core_type<tc>, window_params = [{transform_indices = @transform_0, window_bounds = array<i64: 8, 128>}, {transform_indices = @transform_1, window_bounds = array<i64: 8, 128>}, {transform_indices = @transform_2, window_bounds = array<i64: 8, 128>}, {transform_indices = @transform_3, window_bounds = array<i64: 8, 128>}, {transform_indices = @transform_4, window_bounds = array<i64: 8, 1>}]} {
    %c0_i32 = arith.constant 0 : i32
    %0 = arith.cmpi eq, %arg1, %c0_i32 : i32
    %1 = arith.extui %0 : i1 to i32
    %c0_i32_0 = arith.constant 0 : i32
    %2 = arith.cmpi ne, %1, %c0_i32_0 : i32
    scf.if %2 {
      %cst_37 = arith.constant 0xFF800000 : f32
      %50 = vector.broadcast %cst_37 : f32 to vector<8x1xf32>
      %c0_38 = arith.constant 0 : index
      %c0_39 = arith.constant 0 : index
      %51 = vector.load %arg7[%c0_38, %c0_39] : memref<8x1xf32, #tpu.memory_space<vmem>>, vector<8x1xf32>
      tpu.vector_store %arg7[%c0_38, %c0_39], %50 {strides = array<i32>} : memref<8x1xf32, #tpu.memory_space<vmem>>, vector<8x1xf32>,
      %cst_40 = arith.constant 0.000000e+00 : f32
      %52 = vector.broadcast %cst_40 : f32 to vector<8x1xf32>
      %c0_41 = arith.constant 0 : index
      %c0_42 = arith.constant 0 : index
      %53 = vector.load %arg8[%c0_41, %c0_42] : memref<8x1xf32, #tpu.memory_space<vmem>>, vector<8x1xf32>
      tpu.vector_store %arg8[%c0_41, %c0_42], %52 {strides = array<i32>} : memref<8x1xf32, #tpu.memory_space<vmem>>, vector<8x1xf32>,
      %cst_43 = arith.constant 0xFF800000 : f32
      %54 = vector.broadcast %cst_43 : f32 to vector<8x1xf32>
      %c0_44 = arith.constant 0 : index
      %c0_45 = arith.constant 0 : index
      %55 = vector.load %arg9[%c0_44, %c0_45] : memref<8x1xf32, #tpu.memory_space<vmem>>, vector<8x1xf32>
      tpu.vector_store %arg9[%c0_44, %c0_45], %54 {strides = array<i32>} : memref<8x1xf32, #tpu.memory_space<vmem>>, vector<8x1xf32>,
      %cst_46 = arith.constant 0.000000e+00 : f32
      %56 = vector.broadcast %cst_46 : f32 to vector<8x1xf32>
      %c0_47 = arith.constant 0 : index
      %c0_48 = arith.constant 0 : index
      %57 = vector.load %arg10[%c0_47, %c0_48] : memref<8x1xf32, #tpu.memory_space<vmem>>, vector<8x1xf32>
      tpu.vector_store %arg10[%c0_47, %c0_48], %56 {strides = array<i32>} : memref<8x1xf32, #tpu.memory_space<vmem>>, vector<8x1xf32>,
    } else {
    }
    %c0 = arith.constant 0 : index
    %c0_1 = arith.constant 0 : index
    %3 = vector.load %arg2[%c0, %c0_1] : memref<8x128xf32, #tpu.memory_space<vmem>>, vector<8x128xf32>
    %c0_2 = arith.constant 0 : index
    %c0_3 = arith.constant 0 : index
    %4 = vector.load %arg3[%c0_2, %c0_3] : memref<8x128xf32, #tpu.memory_space<vmem>>, vector<8x128xf32>
    %cst = arith.constant dense<0.000000e+00> : vector<8x8xf32>
    %5 = tpu.matmul %3, %4, %cst {dimension_numbers = #tpu.dot_dimension_numbers<[1], [1], [0], [0], [0, 0, 1, 0], [], []>} : vector<8x128xf32>, vector<8x128xf32>, vector<8x8xf32> -> vector<8x8xf32>
    %cst_4 = arith.constant 2.000000e+01 : f32
    %6 = vector.broadcast %cst_4 : f32 to vector<8x8xf32>
    %7 = arith.mulf %5, %6 : vector<8x8xf32>
    %c0_5 = arith.constant 0 : index
    %c0_6 = arith.constant 0 : index
    %8 = vector.load %arg4[%c0_5, %c0_6] : memref<8x128xf32, #tpu.memory_space<vmem>>, vector<8x128xf32>
    %c0_7 = arith.constant 0 : index
    %c0_8 = arith.constant 0 : index
    %9 = vector.load %arg5[%c0_7, %c0_8] : memref<8x128xf32, #tpu.memory_space<vmem>>, vector<8x128xf32>
    %cst_9 = arith.constant dense<0.000000e+00> : vector<8x8xf32>
    %10 = tpu.matmul %8, %9, %cst_9 {dimension_numbers = #tpu.dot_dimension_numbers<[1], [1], [0], [0], [0, 0, 1, 0], [], []>} : vector<8x128xf32>, vector<8x128xf32>, vector<8x8xf32> -> vector<8x8xf32>
    %cst_10 = arith.constant 2.000000e+01 : f32
    %11 = vector.broadcast %cst_10 : f32 to vector<8x8xf32>
    %12 = arith.mulf %10, %11 : vector<8x8xf32>
    %c0_11 = arith.constant 0 : index
    %c0_12 = arith.constant 0 : index
    %13 = vector.load %arg7[%c0_11, %c0_12] : memref<8x1xf32, #tpu.memory_space<vmem>>, vector<8x1xf32>
    %cst_13 = arith.constant dense<0xFF800000> : vector<8xf32>
    %14 = vector.multi_reduction <maximumf>, %7, %cst_13 [1] : vector<8x8xf32> to vector<8xf32>
    %15 = vector.shape_cast %14 : vector<8xf32> to vector<8x1xf32>
    %16 = arith.maximumf %13, %15 : vector<8x1xf32>
    %c0_14 = arith.constant 0 : index
    %c0_15 = arith.constant 0 : index
    %17 = vector.load %arg8[%c0_14, %c0_15] : memref<8x1xf32, #tpu.memory_space<vmem>>, vector<8x1xf32>
    %c0_16 = arith.constant 0 : index
    %c0_17 = arith.constant 0 : index
    %18 = vector.load %arg7[%c0_16, %c0_17] : memref<8x1xf32, #tpu.memory_space<vmem>>, vector<8x1xf32>
    %19 = arith.subf %18, %16 : vector<8x1xf32>
    %20 = math.exp %19 : vector<8x1xf32>
    %21 = arith.mulf %17, %20 : vector<8x1xf32>
    %22 = vector.broadcast %16 : vector<8x1xf32> to vector<8x8xf32>
    %23 = arith.subf %7, %22 : vector<8x8xf32>
    %24 = math.exp %23 : vector<8x8xf32>
    %cst_18 = arith.constant dense<0.000000e+00> : vector<8xf32>
    %25 = vector.multi_reduction <add>, %24, %cst_18 [1] : vector<8x8xf32> to vector<8xf32>
    %26 = vector.shape_cast %25 : vector<8xf32> to vector<8x1xf32>
    %27 = arith.addf %21, %26 : vector<8x1xf32>
    %c0_19 = arith.constant 0 : index
    %c0_20 = arith.constant 0 : index
    %28 = vector.load %arg8[%c0_19, %c0_20] : memref<8x1xf32, #tpu.memory_space<vmem>>, vector<8x1xf32>
    tpu.vector_store %arg8[%c0_19, %c0_20], %27 {strides = array<i32>} : memref<8x1xf32, #tpu.memory_space<vmem>>, vector<8x1xf32>,
    %c0_21 = arith.constant 0 : index
    %c0_22 = arith.constant 0 : index
    %29 = vector.load %arg7[%c0_21, %c0_22] : memref<8x1xf32, #tpu.memory_space<vmem>>, vector<8x1xf32>
    tpu.vector_store %arg7[%c0_21, %c0_22], %16 {strides = array<i32>} : memref<8x1xf32, #tpu.memory_space<vmem>>, vector<8x1xf32>,
    %c0_23 = arith.constant 0 : index
    %c0_24 = arith.constant 0 : index
    %30 = vector.load %arg9[%c0_23, %c0_24] : memref<8x1xf32, #tpu.memory_space<vmem>>, vector<8x1xf32>
    %cst_25 = arith.constant dense<0xFF800000> : vector<8xf32>
    %31 = vector.multi_reduction <maximumf>, %12, %cst_25 [1] : vector<8x8xf32> to vector<8xf32>
    %32 = vector.shape_cast %31 : vector<8xf32> to vector<8x1xf32>
    %33 = arith.maximumf %30, %32 : vector<8x1xf32>
    %c0_26 = arith.constant 0 : index
    %c0_27 = arith.constant 0 : index
    %34 = vector.load %arg10[%c0_26, %c0_27] : memref<8x1xf32, #tpu.memory_space<vmem>>, vector<8x1xf32>
    %c0_28 = arith.constant 0 : index
    %c0_29 = arith.constant 0 : index
    %35 = vector.load %arg9[%c0_28, %c0_29] : memref<8x1xf32, #tpu.memory_space<vmem>>, vector<8x1xf32>
    %36 = arith.subf %35, %33 : vector<8x1xf32>
    %37 = math.exp %36 : vector<8x1xf32>
    %38 = arith.mulf %34, %37 : vector<8x1xf32>
    %39 = vector.broadcast %33 : vector<8x1xf32> to vector<8x8xf32>
    %40 = arith.subf %12, %39 : vector<8x8xf32>
    %41 = math.exp %40 : vector<8x8xf32>
    %cst_30 = arith.constant dense<0.000000e+00> : vector<8xf32>
    %42 = vector.multi_reduction <add>, %41, %cst_30 [1] : vector<8x8xf32> to vector<8xf32>
    %43 = vector.shape_cast %42 : vector<8xf32> to vector<8x1xf32>
    %44 = arith.addf %38, %43 : vector<8x1xf32>
    %c0_31 = arith.constant 0 : index
    %c0_32 = arith.constant 0 : index
    %45 = vector.load %arg10[%c0_31, %c0_32] : memref<8x1xf32, #tpu.memory_space<vmem>>, vector<8x1xf32>
    tpu.vector_store %arg10[%c0_31, %c0_32], %44 {strides = array<i32>} : memref<8x1xf32, #tpu.memory_space<vmem>>, vector<8x1xf32>,
    %c0_33 = arith.constant 0 : index
    %c0_34 = arith.constant 0 : index
    %46 = vector.load %arg9[%c0_33, %c0_34] : memref<8x1xf32, #tpu.memory_space<vmem>>, vector<8x1xf32>
    tpu.vector_store %arg9[%c0_33, %c0_34], %33 {strides = array<i32>} : memref<8x1xf32, #tpu.memory_space<vmem>>, vector<8x1xf32>,
    %c0_i32_35 = arith.constant 0 : i32
    %47 = arith.cmpi eq, %arg1, %c0_i32_35 : i32
    %48 = arith.extui %47 : i1 to i32
    %c0_i32_36 = arith.constant 0 : i32
    %49 = arith.cmpi ne, %48, %c0_i32_36 : i32
    scf.if %49 {
      %c0_37 = arith.constant 0 : index
      %c0_38 = arith.constant 0 : index
      %50 = vector.load %arg2[%c0_37, %c0_38] : memref<8x128xf32, #tpu.memory_space<vmem>>, vector<8x128xf32>
      %c0_39 = arith.constant 0 : index
      %c0_40 = arith.constant 0 : index
      %51 = vector.load %arg4[%c0_39, %c0_40] : memref<8x128xf32, #tpu.memory_space<vmem>>, vector<8x128xf32>
      %52 = arith.mulf %50, %51 : vector<8x128xf32>
      %cst_41 = arith.constant dense<0.000000e+00> : vector<8xf32>
      %53 = vector.multi_reduction <add>, %52, %cst_41 [1] : vector<8x128xf32> to vector<8xf32>
      %54 = vector.shape_cast %53 : vector<8xf32> to vector<8x1xf32>
      %cst_42 = arith.constant 2.000000e+01 : f32
      %55 = vector.broadcast %cst_42 : f32 to vector<8x1xf32>
      %56 = arith.mulf %54, %55 : vector<8x1xf32>
      %c0_43 = arith.constant 0 : index
      %c0_44 = arith.constant 0 : index
      %57 = vector.load %arg7[%c0_43, %c0_44] : memref<8x1xf32, #tpu.memory_space<vmem>>, vector<8x1xf32>
      %c0_45 = arith.constant 0 : index
      %c0_46 = arith.constant 0 : index
      %58 = vector.load %arg8[%c0_45, %c0_46] : memref<8x1xf32, #tpu.memory_space<vmem>>, vector<8x1xf32>
      %59 = math.log %58 : vector<8x1xf32>
      %60 = arith.addf %57, %59 : vector<8x1xf32>
      %c0_47 = arith.constant 0 : index
      %c0_48 = arith.constant 0 : index
      %61 = vector.load %arg9[%c0_47, %c0_48] : memref<8x1xf32, #tpu.memory_space<vmem>>, vector<8x1xf32>
      %62 = arith.addf %60, %61 : vector<8x1xf32>
      %c0_49 = arith.constant 0 : index
      %c0_50 = arith.constant 0 : index
      %63 = vector.load %arg10[%c0_49, %c0_50] : memref<8x1xf32, #tpu.memory_space<vmem>>, vector<8x1xf32>
      %64 = math.log %63 : vector<8x1xf32>
      %65 = arith.addf %62, %64 : vector<8x1xf32>
      %cst_51 = arith.constant 2.000000e+00 : f32
      %66 = vector.broadcast %cst_51 : f32 to vector<8x1xf32>
      %67 = arith.mulf %66, %56 : vector<8x1xf32>
      %68 = arith.subf %65, %67 : vector<8x1xf32>
      %c0_52 = arith.constant 0 : index
      %c0_53 = arith.constant 0 : index
      %69 = vector.load %arg6[%c0_52, %c0_53] : memref<8x1xf32, #tpu.memory_space<vmem>>, vector<8x1xf32>
      tpu.vector_store %arg6[%c0_52, %c0_53], %68 {strides = array<i32>} : memref<8x1xf32, #tpu.memory_space<vmem>>, vector<8x1xf32>,
    } else {
    }
    return
  }
  func.func @transform_0(%arg0: i32, %arg1: i32) -> (i32, i32) {
    %c0_i32 = arith.constant 0 : i32
    %c0_i32_0 = arith.constant 0 : i32
    return %arg0, %c0_i32 : i32, i32
  }
  func.func @transform_1(%arg0: i32, %arg1: i32) -> (i32, i32) {
    %c0_i32 = arith.constant 0 : i32
    %c0_i32_0 = arith.constant 0 : i32
    return %arg1, %c0_i32 : i32, i32
  }
  func.func @transform_2(%arg0: i32, %arg1: i32) -> (i32, i32) {
    %c0_i32 = arith.constant 0 : i32
    %c0_i32_0 = arith.constant 0 : i32
    return %arg0, %c0_i32 : i32, i32
  }
  func.func @transform_3(%arg0: i32, %arg1: i32) -> (i32, i32) {
    %c0_i32 = arith.constant 0 : i32
    %c0_i32_0 = arith.constant 0 : i32
    return %arg1, %c0_i32 : i32, i32
  }
  func.func @transform_4(%arg0: i32, %arg1: i32) -> (i32, i32) {
    %c0_i32 = arith.constant 0 : i32
    %c0_i32_0 = arith.constant 0 : i32
    return %arg0, %c0_i32 : i32, i32
  }
}

</mosaic_0001>

<bundles_post_ra>
// kernel: tpu_custom_call.1
= control target key start
LH: loop header
LB: loop body
LE: loop exit
PB: predicated region body
PF: predicated region fallthrough
CT: control target
= control target key end

     0   :  { %9 = vsyncpa [#allocation7], 0  ;;  %s390_s0 = inlined_call_operand.hbm [shape: f32[8,128], index: 0, kind: input, shape index: {}]   ;;  %s391_s1 = inlined_call_operand.hbm [shape: f32[8,128], index: 1, kind: input, shape index: {}]   ;;  %s392_s2 = inlined_call_operand.hbm [shape: f32[8,128], index: 2, kind: input, shape index: {}]   ;;  %s393_s3 = inlined_call_operand.hbm [shape: f32[8,128], index: 3, kind: input, shape index: {}]   ;;  %s394_s4 = inlined_call_operand.vmem [shape: f32[8,1], index: 4, kind: output, shape index: {}]  }
   0x1   :  { %10 = vsyncpa [#allocation9], 0  ;;  %s28_s17 = sshll.u32 %s391_s1, 4  ;;  %s29_s17 = int_to_ptr.hbm [resolvable:$true] %s28_s17 }
   0x2   :  { %11 = vsyncpa [#allocation12], 0  ;;  %s330_s18 = smov [#allocation8]   ;;  %s17_s22 = sshll.u32 %s390_s0, 4  ;;  %s18_s22 = int_to_ptr.hbm [resolvable:$true] %s17_s22 }
   0x3   :  { %s30_s19 = sshll.u32 %s330_s18, 4  ;;  %s331_s23 = smov [#allocation6]   ;;  %s31_s19 = int_to_ptr.vmem [resolvable:$true] %s30_s19 }
   0x4   :  { %33 = dma.hbm_to_vmem [thread:$0]  %s29_s17, 128, %s31_s19, [#allocation9]  }
   0x5   :  { %s19_s24 = sshll.u32 %s331_s23, 4  ;;  %s39_s27 = sshll.u32 %s392_s2, 4  ;;  %s20_s24 = int_to_ptr.vmem [resolvable:$true] %s19_s24  ;;  %s40_s27 = int_to_ptr.hbm [resolvable:$true] %s39_s27 }
   0x6   :  { %22 = dma.hbm_to_vmem [thread:$0]  %s18_s22, 128, %s20_s24, [#allocation7]  }
   0x7   :  { %s50_s29 = sshll.u32 %s393_s3, 4  ;;  %s332_s30 = smov [#allocation10]   ;;  %s51_s29 = int_to_ptr.hbm [resolvable:$true] %s50_s29 }
   0x8   :  { %s41_s5 = sshll.u32 %s332_s30, 4  ;;  %s333_s0 = smov [#allocation11]   ;;  %s42_s5 = int_to_ptr.vmem [resolvable:$true] %s41_s5 }
   0x9   :  { %44 = dma.hbm_to_vmem [thread:$0]  %s40_s27, 128, %s42_s5, [#allocation9]  }
   0xa   :  { %s52_s6 = sshll.u32 %s333_s0, 4  ;;  %s53_s6 = int_to_ptr.vmem [resolvable:$true] %s52_s6 }
   0xb   :  { %55 = dma.hbm_to_vmem [thread:$0]  %s51_s29, 128, %s53_s6, [#allocation12]  }
   0xc   :  { %324 = dma.done.wait [#allocation7], 128  }
   0xd   :  { %325 = vsyncadd [#allocation7], 4294967168 }
   0xe   :  { %326 = dma.done.wait [#allocation9], 256  }
   0xf   :  { %327 = vsyncadd [#allocation9], 4294967040 }
  0x10   :  { %328 = dma.done.wait [#allocation12], 128  }
  0x11   :  { %329 = vsyncadd [#allocation12], 4294967168  ;;  %v82_v0 = vld [vmem:[#allocation8] sm:$0xff]  ;;  %v105_v1 = vld [vmem:[#allocation11] sm:$0xff]  ;;  %vm76_vm0 = vcmask 7168   ;;  %v334_v4 = vmov -inf  }
  0x12   :  { %98 = vmatpush.xpose.msra.mxu0 %v82_v0  ;;  %v81_v2 = vld [vmem:[#allocation6] sm:$0xff]  ;;  %121 = vmatpush.xpose.msra.mxu1 %v105_v1  ;;  %v104_v3 = vld [vmem:[#allocation10] sm:$0xff]  ;;  %77 = vst.msk [vmem:[#allocation2] sm:$0xff] %vm76_vm0, %v334_v4  ;;  %vm128_vm1 = vcmask 64512   ;;  %v335_v11 = vmov 0   ;;  %v336_v12 = vmov 0.0  }
  0x13   :  { %79 = vst.msk [vmem:[#allocation4] sm:$0xff] %vm76_vm0, %v334_v4  ;;  %214 = vset.pattern.permute.xlu1 %v335_v11  ;;  %215 = vset.pattern.permute.xlu0 %v335_v11  ;;  %v182_v21 = vmul.f32 %v104_v3, %v81_v2 }
  0x14   :  { %78 = vst.msk [vmem:[#allocation3] sm:$0xff] %vm76_vm0, %v336_v12 }
  0x15   :  { %99 = vmatmul.f32.vlgmr.msra.gmra.mxu0 %v81_v2  ;;  %122 = vmatmul.f32.vlgmr.msra.gmra.mxu1 %v104_v3  ;;  %80 = vst.msk [vmem:[#allocation5] sm:$0xff] %vm76_vm0, %v336_v12 }
  0x19   :  { %v127_v13 = vld [vmem:[#allocation2] sm:$0xff] }
  0x1a   :  { %v153_v17 = vld [vmem:[#allocation4] sm:$0xff] }
  0x1b   :  { %v133_v35 = vld [vmem:[#allocation3] sm:$0xff] }
  0x1c   :  { %v158_v40 = vld [vmem:[#allocation5] sm:$0xff] }
  0x92   :  { %v100_v5 = vpop.f32.mrf.mxu0  ;;  %v123_v7 = vpop.f32.mrf.mxu1 }
  0x93   :  { %v103_v6 = vmul.f32 20.0, %v100_v5  ;;  %v126_v9 = vmul.f32 20.0, %v123_v7 }
  0x95   :  { %v129_v8 = vsel %vm128_vm1, %v103_v6, -inf  ;;  %v154_v10 = vsel %vm128_vm1, %v126_v9, -inf }
  0x96   :  { %130 = vmax.xlane.f32.xlu0 %v129_v8 }
  0x9e   :  { %155 = vmax.xlane.f32.xlu0 %v154_v10 }
  0xa6   :  { %183 = vadd.xlane.f32.xlu0 %v182_v21 }
 0x109   :  { %v131_v14 = vpop.xlane.xlu0 %130 }
 0x10a   :  { %v132_v15 = vmax.f32 %v127_v13, %v131_v14 }
 0x10c   :  { %v134_v16 = vsub.f32 %v127_v13, %v132_v15  ;;  %152 = vst.msk [vmem:[#allocation2] sm:$0xff] %vm76_vm0, %v132_v15  ;;  %140 = vperm.xlu1 %214, %v132_v15  }
 0x10e   :  { %v135_v32 = vmul.f32 1.442695, %v134_v16 }
 0x111   :  { %v156_v18 = vpop.xlane.xlu0 %155 }
 0x112   :  { %v157_v19 = vmax.f32 %v153_v17, %v156_v18 }
 0x113   :  { %v186_v49 = vld [vmem:[#allocation2] sm:$0xff] }
 0x114   :  { %v159_v20 = vsub.f32 %v153_v17, %v157_v19  ;;  %176 = vst.msk [vmem:[#allocation4] sm:$0xff] %vm76_vm0, %v157_v19  ;;  %165 = vperm.xlu1 %214, %v157_v19  }
 0x116   :  { %v160_v33 = vmul.f32 1.442695, %v159_v20 }
 0x119   :  { %v184_v48 = vpop.xlane.xlu0 %183 }
 0x11a   :  { %v185_v50 = vmul.f32 20.0, %v184_v48 }
 0x11b   :  { %v191_v53 = vld [vmem:[#allocation4] sm:$0xff] }
 0x11c   :  { %v197_v56 = vmul.f32 2.0, %v185_v50 }
 0x17e   :  { %v141_v22 = vpop.permute.xlu1 %140 }
 0x17f   :  { %v143_v23 = vsub.f32 %v103_v6, %v141_v22 }
 0x181   :  { %v144_v24 = vmul.f32 1.442695, %v143_v23 }
 0x183   :  { %216 = vpow2.f32 %v144_v24 }
 0x186   :  { %v166_v25 = vpop.permute.xlu1 %165 }
 0x187   :  { %v168_v26 = vsub.f32 %v126_v9, %v166_v25 }
 0x189   :  { %v217_v27 = vpop.eup %216  ;;  %v169_v28 = vmul.f32 1.442695, %v168_v26 }
 0x18a   :  { %v146_v29 = vsel %vm128_vm1, %v217_v27, 0.0 }
 0x18b   :  { %218 = vpow2.f32 %v169_v28  ;;  %147 = vadd.xlane.f32.xlu2 %v146_v29 }
 0x18c   :  { %220 = vpow2.f32 %v135_v32 }
 0x18d   :  { %222 = vpow2.f32 %v160_v33 }
 0x191   :  { %v219_v30 = vpop.eup %218 }
 0x192   :  { %v171_v31 = vsel %vm128_vm1, %v219_v30, 0.0  ;;  %v221_v34 = vpop.eup %220 }
 0x193   :  { %172 = vadd.xlane.f32.xlu2 %v171_v31  ;;  %v137_v36 = vmul.f32 %v221_v34, %v133_v35  ;;  %v223_v39 = vpop.eup %222 }
 0x194   :  { %v162_v41 = vmul.f32 %v223_v39, %v158_v40 }
 0x1fe   :  { %v148_v37 = vpop.xlane.xlu2 %147 }
 0x1ff   :  { %v149_v38 = vadd.f32 %v148_v37, %v137_v36 }
 0x201   :  { %151 = vst.msk [vmem:[#allocation3] sm:$0xff] %vm76_vm0, %v149_v38 }
 0x206   :  { %v173_v42 = vpop.xlane.xlu2 %172 }
 0x207   :  { %v174_v43 = vadd.f32 %v173_v42, %v162_v41 }
 0x208   :  { %v187_v44 = vld [vmem:[#allocation3] sm:$0xff] }
 0x209   :  { %175 = vst.msk [vmem:[#allocation5] sm:$0xff] %vm76_vm0, %v174_v43  ;;  %224 = vlog2.f32 %v187_v44 }
 0x20f   :  { %v225_v45 = vpop.eup %224 }
 0x210   :  { %v189_v46 = vmul.f32 0.6931472, %v225_v45  ;;  %v193_v47 = vld [vmem:[#allocation5] sm:$0xff] }
 0x211   :  { %226 = vlog2.f32 %v193_v47 }
 0x212   :  { %v190_v51 = vadd.f32 %v189_v46, %v186_v49 }
 0x214   :  { %v192_v54 = vadd.f32 %v191_v53, %v190_v51 }
 0x217   :  { %v227_v52 = vpop.eup %226 }
 0x218   :  { %v195_v55 = vmul.f32 0.6931472, %v227_v52 }
 0x21a   :  { %v196_v57 = vadd.f32 %v195_v55, %v192_v54 }
 0x21c   :  { %v198_v58 = vsub.f32 %v196_v57, %v197_v56 }
 0x21e   :  { %199 = vst.msk [vmem:[%s394_s4] sm:$0xff] %vm76_vm0, %v198_v58 }
 0x21f   :  { %204 = vsyncpa [#allocation7], 1 }
 0x220   :  { %205 = vsyncpa [#allocation9], 1 }
 0x221   :  { %206 = vsyncpa [#allocation12], 1 }

</bundles_post_ra>
